<compile_context>
chip_gen: v7x
topology: tpu7x:2x2x1
jax: 0.10.0
libtpu: 0.0.40
codegen_flags: <defaults>
</compile_context>

<pallas_src>
import functools

import jax
import jax.numpy as jnp
from jax import lax
from jax.experimental import pallas as pl
from jax.experimental.pallas import tpu as pltpu


def _round_up(x, m):
    return ((x + m - 1) // m) * m


def _cdiv(a, b):
    return -(-a // b)


# ----------------------------------------------------------------------------
# channels_last: x reshaped to (M, C), normalize over the last (lane) axis.
# ----------------------------------------------------------------------------
def _ln_last_kernel(x_ref, g_ref, b_ref, o_ref, *, eps):
    x = x_ref[...].astype(jnp.float32)                        # (TM, C)
    # Single-pass statistics: two independent lane reductions, f32 accumulate.
    mu = jnp.mean(x, axis=-1, keepdims=True)                  # (TM, 1)
    ex2 = jnp.mean(x * x, axis=-1, keepdims=True)             # (TM, 1)
    var = jnp.maximum(ex2 - mu * mu, 0.0)                     # clamp: cancellation
    y = (x - mu) * lax.rsqrt(var + eps)
    y = y * g_ref[...].astype(jnp.float32) + b_ref[...].astype(jnp.float32)
    o_ref[...] = y.astype(o_ref.dtype)


def _pick_row_tile(M, C, itemsize, *, max_rows=1024, block_budget=2 << 20):
    """Largest row tile that keeps one (tm, C) block under `block_budget` bytes,
    is a multiple of 8 (unless it covers the whole array), and leaves at least
    two grid steps when possible (v7x megacore)."""
    tm = block_budget // max(1, C * itemsize)
    tm = max(8, min(max_rows, (tm // 8) * 8))
    tm = min(tm, _round_up(M, 8))
    if M > 8 and tm >= M:
        # split so both TensorCores on v7x get at least one step
        tm = max(8, _round_up(_cdiv(M, 2), 8))
    return tm


def layer_norm_channels_last(x, weight, bias, eps=1e-6):
    """x: (..., C). Normalize over the trailing channel axis."""
    C = x.shape[-1]
    x2 = x.reshape(-1, C)
    M = x2.shape[0]
    itemsize = jnp.dtype(x.dtype).itemsize
    tm = _pick_row_tile(M, C, itemsize)
    grid = (pl.cdiv(M, tm),)

    # Pipeline VMEM: 2x in + 2x out buffers + in-kernel f32 intermediates.
    block_bytes = tm * C * itemsize
    vmem_est = 4 * block_bytes + 4 * tm * C * 4 + 4 * C * 4 + (1 << 20)
    vmem_limit = int(min(max(vmem_est, 16 << 20), 48 << 20))  # safe on v5e..v7x

    cost = pl.CostEstimate(
        flops=8 * M * C,
        transcendentals=M,
        bytes_accessed=2 * M * C * itemsize + 2 * C * 4,
    )
    out = pl.pallas_call(
        functools.partial(_ln_last_kernel, eps=float(eps)),
        out_shape=jax.ShapeDtypeStruct((M, C), x.dtype),
        grid=grid,
        in_specs=[
            pl.BlockSpec((tm, C), lambda i: (i, 0)),
            pl.BlockSpec((1, C), lambda i: (0, 0)),   # constant-indexed: VMEM-resident
            pl.BlockSpec((1, C), lambda i: (0, 0)),
        ],
        out_specs=pl.BlockSpec((tm, C), lambda i: (i, 0)),
        compiler_params=pltpu.CompilerParams(
            dimension_semantics=("parallel",),
            vmem_limit_bytes=vmem_limit,
        ),
        cost_estimate=cost,
    )(x2, weight.reshape(1, C), bias.reshape(1, C))
    return out.reshape(x.shape)


# ----------------------------------------------------------------------------
# channels_first: x viewed as (N, C, L); normalize over C (sublane axis) with
# the spatial axis L on lanes -> lane-dense unmasked stores even for small C.
# ----------------------------------------------------------------------------
def _ln_first_kernel(x_ref, g_ref, b_ref, o_ref, *, eps):
    x = x_ref[0].astype(jnp.float32)                           # (C, TL)
    mu = jnp.mean(x, axis=0, keepdims=True)                    # (1, TL)
    ex2 = jnp.mean(x * x, axis=0, keepdims=True)               # (1, TL)
    var = jnp.maximum(ex2 - mu * mu, 0.0)
    y = (x - mu) * lax.rsqrt(var + eps)
    y = y * g_ref[...].astype(jnp.float32) + b_ref[...].astype(jnp.float32)
    o_ref[0] = y.astype(o_ref.dtype)


def _pick_lane_tile(N, L, lane_tile):
    """Lane tile: full L when it fits, otherwise a multiple of 128 (required by
    the (8,128) BlockSpec rule).  Split when it would leave a 1-step grid so
    both v7x TensorCores get work."""
    lane_tile = max(128, (int(lane_tile) // 128) * 128)
    tl = L if L <= lane_tile else lane_tile
    if N * _cdiv(L, tl) < 2 and L > 256:
        tl = max(128, _round_up(_cdiv(L, 2), 128))
    if tl < L:
        assert tl % 128 == 0, "lane tile must be a multiple of 128 when it tiles L"
    return tl


def layer_norm_channels_first(x, weight, bias, eps=1e-6, lane_tile=2048):
    """x: (N, C, *spatial). Normalize over axis 1 (the channel axis)."""
    N, C = x.shape[0], x.shape[1]
    L = 1
    for s in x.shape[2:]:
        L *= s
    x3 = x.reshape(N, C, L)
    itemsize = jnp.dtype(x.dtype).itemsize

    tl = _pick_lane_tile(N, L, lane_tile)
    grid = (N, pl.cdiv(L, tl))

    block_bytes = C * tl * itemsize
    vmem_est = 4 * block_bytes + 4 * C * tl * 4 + 4 * C * 4 + (1 << 20)
    vmem_limit = int(min(max(vmem_est, 16 << 20), 48 << 20))

    cost = pl.CostEstimate(
        flops=8 * N * C * L,
        transcendentals=N * L,
        bytes_accessed=2 * N * C * L * itemsize + 2 * C * 4,
    )
    out = pl.pallas_call(
        functools.partial(_ln_first_kernel, eps=float(eps)),
        out_shape=jax.ShapeDtypeStruct((N, C, L), x.dtype),
        grid=grid,
        in_specs=[
            pl.BlockSpec((1, C, tl), lambda n, l: (n, 0, l)),
            pl.BlockSpec((C, 1), lambda n, l: (0, 0)),         # constant-indexed
            pl.BlockSpec((C, 1), lambda n, l: (0, 0)),
        ],
        out_specs=pl.BlockSpec((1, C, tl), lambda n, l: (n, 0, l)),
        compiler_params=pltpu.CompilerParams(
            dimension_semantics=("parallel", "parallel"),
            vmem_limit_bytes=vmem_limit,
        ),
        cost_estimate=cost,
    )(x3, weight.reshape(C, 1), bias.reshape(C, 1))
    return out.reshape(x.shape)


# ----------------------------------------------------------------------------
# Module-equivalent entry point
# ----------------------------------------------------------------------------
def layer_norm(x, weight, bias, eps=1e-6, data_format="channels_first"):
    if data_format == "channels_last":
        return layer_norm_channels_last(x, weight, bias, eps)
    elif data_format == "channels_first":
        return layer_norm_channels_first(x, weight, bias, eps)
    raise ValueError(f"not support data format '{data_format}'")


# ----------------------------------------------------------------------------
# pure-JAX references for verification
# ----------------------------------------------------------------------------
def _ref_channels_first(x, w, b, eps):
    mu = jnp.mean(x, axis=1, keepdims=True)
    var = jnp.mean(jnp.square(x - mu), axis=1, keepdims=True)
    xn = (x - mu) / jnp.sqrt(var + eps)
    shape = (1, -1) + (1,) * (x.ndim - 2)
    return w.reshape(shape) * xn + b.reshape(shape)


def _ref_channels_last(x, w, b, eps):
    mu = jnp.mean(x, axis=-1, keepdims=True)
    var = jnp.mean(jnp.square(x - mu), axis=-1, keepdims=True)
    xn = (x - mu) / jnp.sqrt(var + eps)
    return xn * w + b


# ----------------------------------------------------------------------------
if __name__ == "__main__":
    key = jax.random.PRNGKey(0)
    N, C, H, W = 2, 32, 16, 16
    eps = 1e-6

    k1, k2, k3, k4 = jax.random.split(key, 4)
    weight = 1.0 + 0.1 * jax.random.normal(k1, (C,), dtype=jnp.float32)
    bias = 0.1 * jax.random.normal(k2, (C,), dtype=jnp.float32)

    # channels_first (NCHW, like the MALNet usage)
    x_cf = jax.random.normal(k3, (N, C, H, W), dtype=jnp.float32)
    fwd_cf = jax.jit(functools.partial(layer_norm, eps=eps,
                                       data_format="channels_first"))
    y_cf = fwd_cf(x_cf, weight, bias)
    jax.block_until_ready(y_cf)
    ref_cf = _ref_channels_first(x_cf, weight, bias, eps)
    assert y_cf.shape == x_cf.shape
    assert bool(jnp.all(jnp.isfinite(y_cf)))
    assert bool(jnp.max(jnp.abs(y_cf - ref_cf)) < 1e-4), \
        float(jnp.max(jnp.abs(y_cf - ref_cf)))

    # channels_last (NHWC)
    x_cl = jax.random.normal(k4, (N, H, W, C), dtype=jnp.float32)
    fwd_cl = jax.jit(functools.partial(layer_norm, eps=eps,
                                       data_format="channels_last"))
    y_cl = fwd_cl(x_cl, weight, bias)
    jax.block_until_ready(y_cl)
    ref_cl = _ref_channels_last(x_cl, weight, bias, eps)
    assert y_cl.shape == x_cl.shape
    assert bool(jnp.all(jnp.isfinite(y_cl)))
    assert bool(jnp.max(jnp.abs(y_cl - ref_cl)) < 1e-4), \
        float(jnp.max(jnp.abs(y_cl - ref_cl)))

    print("KERNEL_OK")
</pallas_src>

<mosaic_0001>
module attributes {stable_mosaic.version = 11 : i64} {
  func.func @_ln_first_kernel(%arg0: i32, %arg1: i32, %arg2: memref<1x32x256xf32, #tpu.memory_space<vmem>>, %arg3: memref<32x1xf32, #tpu.memory_space<vmem>>, %arg4: memref<32x1xf32, #tpu.memory_space<vmem>>, %arg5: memref<1x32x256xf32, #tpu.memory_space<vmem>>) attributes {dimension_semantics = [#tpu.dimension_semantics<parallel>, #tpu.dimension_semantics<parallel>], iteration_bounds = array<i64: 2, 1>, scalar_prefetch = 0 : i64, scratch_operands = 0 : i64, tpu.core_type = #tpu.core_type<tc>, window_params = [{transform_indices = @transform_0, window_bounds = array<i64: 1, 32, 256>}, {pipeline_mode = #tpu.pipeline_mode<synchronous>, transform_indices = @transform_1, window_bounds = array<i64: 32, 1>}, {pipeline_mode = #tpu.pipeline_mode<synchronous>, transform_indices = @transform_2, window_bounds = array<i64: 32, 1>}, {transform_indices = @transform_3, window_bounds = array<i64: 1, 32, 256>}]} {
    %c0 = arith.constant 0 : index
    %c0_0 = arith.constant 0 : index
    %c0_1 = arith.constant 0 : index
    %0 = vector.load %arg2[%c0, %c0_0, %c0_1] : memref<1x32x256xf32, #tpu.memory_space<vmem>>, vector<1x32x256xf32>
    %1 = vector.shape_cast %0 : vector<1x32x256xf32> to vector<32x256xf32>
    %cst = arith.constant dense<0.000000e+00> : vector<256xf32>
    %2 = vector.multi_reduction <add>, %1, %cst [0] : vector<32x256xf32> to vector<256xf32>
    %3 = vector.shape_cast %2 : vector<256xf32> to vector<1x256xf32>
    %cst_2 = arith.constant 3.200000e+01 : f32
    %4 = vector.broadcast %cst_2 : f32 to vector<1x256xf32>
    %5 = arith.divf %3, %4 : vector<1x256xf32>
    %6 = arith.mulf %1, %1 : vector<32x256xf32>
    %cst_3 = arith.constant dense<0.000000e+00> : vector<256xf32>
    %7 = vector.multi_reduction <add>, %6, %cst_3 [0] : vector<32x256xf32> to vector<256xf32>
    %8 = vector.shape_cast %7 : vector<256xf32> to vector<1x256xf32>
    %cst_4 = arith.constant 3.200000e+01 : f32
    %9 = vector.broadcast %cst_4 : f32 to vector<1x256xf32>
    %10 = arith.divf %8, %9 : vector<1x256xf32>
    %11 = arith.mulf %5, %5 : vector<1x256xf32>
    %12 = arith.subf %10, %11 : vector<1x256xf32>
    %cst_5 = arith.constant 0.000000e+00 : f32
    %13 = vector.broadcast %cst_5 : f32 to vector<1x256xf32>
    %14 = arith.maximumf %12, %13 : vector<1x256xf32>
    %15 = vector.broadcast %5 : vector<1x256xf32> to vector<32x256xf32>
    %16 = arith.subf %1, %15 : vector<32x256xf32>
    %cst_6 = arith.constant 9.99999997E-7 : f32
    %17 = vector.broadcast %cst_6 : f32 to vector<1x256xf32>
    %18 = arith.addf %14, %17 : vector<1x256xf32>
    %19 = math.rsqrt %18 : vector<1x256xf32>
    %20 = vector.broadcast %19 : vector<1x256xf32> to vector<32x256xf32>
    %21 = arith.mulf %16, %20 : vector<32x256xf32>
    %c0_7 = arith.constant 0 : index
    %c0_8 = arith.constant 0 : index
    %22 = vector.load %arg3[%c0_7, %c0_8] : memref<32x1xf32, #tpu.memory_space<vmem>>, vector<32x1xf32>
    %23 = vector.broadcast %22 : vector<32x1xf32> to vector<32x256xf32>
    %24 = arith.mulf %21, %23 : vector<32x256xf32>
    %c0_9 = arith.constant 0 : index
    %c0_10 = arith.constant 0 : index
    %25 = vector.load %arg4[%c0_9, %c0_10] : memref<32x1xf32, #tpu.memory_space<vmem>>, vector<32x1xf32>
    %26 = vector.broadcast %25 : vector<32x1xf32> to vector<32x256xf32>
    %27 = arith.addf %24, %26 : vector<32x256xf32>
    %c0_11 = arith.constant 0 : index
    %c0_12 = arith.constant 0 : index
    %c0_13 = arith.constant 0 : index
    %28 = vector.load %arg5[%c0_11, %c0_12, %c0_13] : memref<1x32x256xf32, #tpu.memory_space<vmem>>, vector<1x32x256xf32>
    %29 = vector.shape_cast %28 : vector<1x32x256xf32> to vector<32x256xf32>
    %30 = vector.shape_cast %27 : vector<32x256xf32> to vector<1x32x256xf32>
    tpu.vector_store %arg5[%c0_11, %c0_12, %c0_13], %30 {strides = array<i32>} : memref<1x32x256xf32, #tpu.memory_space<vmem>>, vector<1x32x256xf32>,
    return
  }
  func.func @transform_0(%arg0: i32, %arg1: i32) -> (i32, i32, i32) {
    %c0_i32 = arith.constant 0 : i32
    %c0_i32_0 = arith.constant 0 : i32
    return %arg0, %c0_i32, %arg1 : i32, i32, i32
  }
  func.func @transform_1(%arg0: i32, %arg1: i32) -> (i32, i32) {
    %c0_i32 = arith.constant 0 : i32
    %c0_i32_0 = arith.constant 0 : i32
    %c0_i32_1 = arith.constant 0 : i32
    return %c0_i32, %c0_i32_0 : i32, i32
  }
  func.func @transform_2(%arg0: i32, %arg1: i32) -> (i32, i32) {
    %c0_i32 = arith.constant 0 : i32
    %c0_i32_0 = arith.constant 0 : i32
    %c0_i32_1 = arith.constant 0 : i32
    return %c0_i32, %c0_i32_0 : i32, i32
  }
  func.func @transform_3(%arg0: i32, %arg1: i32) -> (i32, i32, i32) {
    %c0_i32 = arith.constant 0 : i32
    %c0_i32_0 = arith.constant 0 : i32
    return %arg0, %c0_i32, %arg1 : i32, i32, i32
  }
}

</mosaic_0001>

<bundles_post_ra>
// kernel: layer_norm.1
= control target key start
LH: loop header
LB: loop body
LE: loop exit
PB: predicated region body
PF: predicated region fallthrough
CT: control target
= control target key end

     0   :  { %s541_s12 = smov 0   ;;  %s543_s13 = smov 0   ;;  %s657_s0 = inlined_call_operand.vmem [shape: f32[2,32,256], index: 0, kind: input, shape index: {}]   ;;  %s658_s1 = inlined_call_operand.vmem [shape: f32[32,1], index: 1, kind: input, shape index: {}]   ;;  %s659_s2 = inlined_call_operand.vmem [shape: f32[32,1], index: 2, kind: input, shape index: {}]   ;;  %s660_s3 = inlined_call_operand.vmem [shape: f32[2,32,256], index: 3, kind: output, shape index: {}]  }
   0x1   :  { %s545_s14 = smov 0  }
   0x2 LB: > { %s25_s15 = sadd.s32 1, %s514_s13  ;;  %p456_p0 = scmp.ge.s32.totalorder %s518_s14, 1  ;;  %s518_s14 = sphi %s545_s14, %s13_s14   ;;  %s514_s13 = sphi %s543_s13, %s662_s13   ;;  %s510_s12 = sphi %s541_s12, %s661_s12  }
   0x3   : > { %p27_p1 = scmp.ge.s32.totalorder %s25_s15, 2  ;;  %p158_p2 = scmp.lt.s32.totalorder %s518_s14, 3 }
   0x5   : > { %s664_s15 = smov (%p27_p1, %s25_s15), 0  ;;  %p159_p3 = pnand %p456_p0, %p158_p2 }
   0x6   : > { %v295_v0 = vld [vmem:[%s658_s1 + $0x10] sm:$0xff] (!%p159_p3)  ;;  %v293_v1 = vld [vmem:[%s658_s1] sm:$0xff] (!%p159_p3)  ;;  %v520_v2 = vmov (!%p159_p3), 0   ;;  %v296_v3 = vld [vmem:[%s658_s1 + $0x18] sm:$0xff] (!%p159_p3)  ;;  %p191_p4 = scmp.lt.s32.totalorder (!%p159_p3), %s510_s12, 1 }
   0x7   : > { %162 = sbr.rel (%p159_p3) target bundleno = 152 (0x98), region = 32  ;;  %491 = vset.pattern.permute.xlu1 (!%p159_p3), %v520_v2  ;;  %490 = vset.pattern.permute.xlu0 (!%p159_p3), %v520_v2  ;;  %v294_v4 = vld [vmem:[%s658_s1 + $0x8] sm:$0xff] (!%p159_p3)  ;;  %v325_v6 = vld [vmem:[%s659_s2] sm:$0xff] (!%p159_p3)  ;;  %v328_v7 = vld [vmem:[%s659_s2 + $0x18] sm:$0xff] (!%p159_p3) }
   0x8   : > { %309 = vperm.xlu1 (!%p159_p3), %491, %v295_v0   ;;  %299 = vperm.xlu0 (!%p159_p3), %490, %v293_v1   ;;  %v326_v5 = vld [vmem:[%s659_s2 + $0x8] sm:$0xff] (!%p159_p3)  ;;  %v327_v8 = vld [vmem:[%s659_s2 + $0x10] sm:$0xff] (!%p159_p3) }
   0xc   : > { %314 = vperm.xlu1 (!%p159_p3), %491, %v296_v3   ;;  %304 = vperm.xlu0 (!%p159_p3), %490, %v294_v4  }
   0xe   : > { %s666_s12 = smov (!%p191_p4, %s510_s12), 1 }
   0xf   : > { %s463_s5 = sshll.u32 %s666_s12, 6 }
  0x10   : > { %336 = vperm.xlu1 %491, %v326_v5   ;;  %331 = vperm.xlu0 %490, %v325_v6   ;;  %s198_s8 = scalar_lea.vmem %s657_s0, %s463_s5  ;;  %s208_s11 = scalar_lea.vmem %s660_s3, %s463_s5 }
  0x11   : > { %v595_v9 = vld [vmem:[%s198_s8] sm:$0xff]  ;;  %v597_v10 = vld [vmem:[%s198_s8 + $0x10] sm:$0xff]  ;;  %v599_v11 = vld [vmem:[%s198_s8 + $0x8] sm:$0xff] }
  0x12   : > { %v601_v12 = vld [vmem:[%s198_s8 + $0x18] sm:$0xff]  ;;  %v218_v13 = vadd.f32 %v597_v10, %v595_v9  ;;  %v239_v14 = vmul.f32 %v595_v9, %v595_v9  ;;  %v241_v15 = vmul.f32 %v597_v10, %v597_v10  ;;  %v609_v16 = vld [vmem:[%s198_s8 + $0x20] sm:$0xff]  ;;  %v240_v18 = vmul.f32 %v599_v11, %v599_v11  ;;  %v617_v20 = vld [vmem:[%s198_s8 + $0x28] sm:$0xff] }
  0x13   : > { %v227_v17 = vadd.f32 %v601_v12, %v599_v11  ;;  %v242_v19 = vmul.f32 %v601_v12, %v601_v12  ;;  %v243_v22 = vmul.f32 %v609_v16, %v609_v16  ;;  %v622_v24 = vld [vmem:[%s198_s8 + $0x30] sm:$0xff]  ;;  %v244_v26 = vmul.f32 %v617_v20, %v617_v20  ;;  %v627_v28 = vld [vmem:[%s198_s8 + $0x38] sm:$0xff] }
  0x14   : > { %346 = vperm.xlu1 %491, %v328_v7   ;;  %341 = vperm.xlu0 %490, %v327_v8   ;;  %v219_v21 = vadd.f32 %v218_v13, %v609_v16  ;;  %v247_v23 = vadd.f32 %v241_v15, %v239_v14  ;;  %v245_v30 = vmul.f32 %v622_v24, %v622_v24 }
  0x15   : > { %v228_v25 = vadd.f32 %v227_v17, %v617_v20  ;;  %v256_v27 = vadd.f32 %v242_v19, %v240_v18  ;;  %v246_v33 = vmul.f32 %v627_v28, %v627_v28 }
  0x16   : > { %v220_v29 = vadd.f32 %v219_v21, %v622_v24  ;;  %v248_v31 = vadd.f32 %v247_v23, %v243_v22 }
  0x17   : > { %v229_v32 = vadd.f32 %v228_v25, %v627_v28  ;;  %v257_v34 = vadd.f32 %v256_v27, %v244_v26 }
  0x18   : > { %v221_v35 = vrot.slane %v220_v29, 4  ;;  %v249_v36 = vadd.f32 %v248_v31, %v245_v30 }
  0x19   : > { %v230_v37 = vrot.slane %v229_v32, 4  ;;  %v258_v38 = vadd.f32 %v257_v34, %v246_v33 }
  0x1a   : > { %v222_v39 = vadd.f32 %v221_v35, %v220_v29  ;;  %v250_v40 = vrot.slane %v249_v36, 4 }
  0x1b   : > { %v231_v41 = vadd.f32 %v230_v37, %v229_v32  ;;  %v259_v42 = vrot.slane %v258_v38, 4 }
  0x1c   : > { %v223_v43 = vrot.slane %v222_v39, 2  ;;  %v251_v44 = vadd.f32 %v250_v40, %v249_v36 }
  0x1d   : > { %v232_v45 = vrot.slane %v231_v41, 2  ;;  %v260_v46 = vadd.f32 %v259_v42, %v258_v38 }
  0x1e   : > { %v224_v47 = vadd.f32 %v223_v43, %v222_v39  ;;  %v252_v48 = vrot.slane %v251_v44, 2 }
  0x1f   : > { %v233_v49 = vadd.f32 %v232_v45, %v231_v41  ;;  %v261_v50 = vrot.slane %v260_v46, 2 }
  0x20   : > { %v225_v51 = vrot.slane %v224_v47, 1  ;;  %v253_v52 = vadd.f32 %v252_v48, %v251_v44 }
  0x21   : > { %v234_v53 = vrot.slane %v233_v49, 1  ;;  %v262_v54 = vadd.f32 %v261_v50, %v260_v46 }
  0x22   : > { %v226_v55 = vadd.f32 %v225_v51, %v224_v47  ;;  %v254_v56 = vrot.slane %v253_v52, 1 }
  0x23   : > { %v235_v57 = vadd.f32 %v234_v53, %v233_v49  ;;  %v263_v58 = vrot.slane %v262_v54, 1 }
  0x24   : > { %v237_v59 = vmul.f32 0.03125, %v226_v55  ;;  %v255_v60 = vadd.f32 %v254_v56, %v253_v52 }
  0x25   : > { %v238_v61 = vmul.f32 0.03125, %v235_v57  ;;  %v264_v62 = vadd.f32 %v263_v58, %v262_v54 }
  0x26   : > { %v265_v63 = vmul.f32 0.03125, %v255_v60  ;;  %v267_v0 = vmul.f32 %v237_v59, %v237_v59  ;;  %v273_v14 = vsub.f32 %v595_v9, %v237_v59  ;;  %v275_v17 = vsub.f32 %v597_v10, %v237_v59 }
  0x27   : > { %v266_v1 = vmul.f32 0.03125, %v264_v62  ;;  %v268_v2 = vmul.f32 %v238_v61, %v238_v61  ;;  %v274_v15 = vsub.f32 %v599_v11, %v238_v61  ;;  %v276_v18 = vsub.f32 %v601_v12, %v238_v61 }
  0x28   : > { %v269_v3 = vsub.f32 %v265_v63, %v267_v0  ;;  %v277_v23 = vsub.f32 %v609_v16, %v237_v59  ;;  %v278_v25 = vsub.f32 %v617_v20, %v238_v61  ;;  %v279_v26 = vsub.f32 %v622_v24, %v237_v59 }
  0x29   : > { %v270_v4 = vsub.f32 %v266_v1, %v268_v2  ;;  %v280_v27 = vsub.f32 %v627_v28, %v238_v61 }
  0x2a   : > { %v271_v5 = vmax.f32 %v269_v3, 0.0 }
  0x2b   : > { %v272_v6 = vmax.f32 %v270_v4, 0.0 }
  0x2c   : > { %v281_v7 = vadd.f32 1e-06, %v271_v5 }
  0x2d   : > { %v282_v8 = vadd.f32 1e-06, %v272_v6 }
  0x2e   : > { %492 = vrsqrt.f32 %v281_v7 }
  0x2f   : > { %494 = vrsqrt.f32 %v282_v8 }
  0x38   : > { %v493_v13 = vpop.eup %492 }
  0x39   : > { %v495_v19 = vpop.eup %494  ;;  %v285_v29 = vmul.f32 %v493_v13, %v273_v14  ;;  %v287_v30 = vmul.f32 %v493_v13, %v275_v17  ;;  %v289_v32 = vmul.f32 %v493_v13, %v277_v23  ;;  %v291_v33 = vmul.f32 %v493_v13, %v279_v26 }
  0x3a   : > { %v286_v9 = vmul.f32 %v495_v19, %v274_v15  ;;  %v288_v11 = vmul.f32 %v495_v19, %v276_v18  ;;  %v290_v12 = vmul.f32 %v495_v19, %v278_v25  ;;  %v292_v34 = vmul.f32 %v495_v19, %v280_v27 }
  0x87   : > { %v310_v21 = vpop.permute.xlu1 %309  ;;  %v300_v22 = vpop.permute.xlu0 %299 }
  0x88   : > { %v317_v35 = vmul.f32 %v300_v22, %v285_v29  ;;  %v318_v36 = vmul.f32 %v300_v22, %v286_v9  ;;  %v321_v41 = vmul.f32 %v310_v21, %v289_v32  ;;  %v322_v42 = vmul.f32 %v310_v21, %v290_v12 }
  0x8b   : > { %v315_v31 = vpop.permute.xlu1 %314  ;;  %v305_v10 = vpop.permute.xlu0 %304 }
  0x8c   : > { %v319_v16 = vmul.f32 %v305_v10, %v287_v30  ;;  %v320_v37 = vmul.f32 %v305_v10, %v288_v11  ;;  %v323_v43 = vmul.f32 %v315_v31, %v291_v33  ;;  %v324_v44 = vmul.f32 %v315_v31, %v292_v34 }
  0x8f   : > { %v337_v20 = vpop.permute.xlu1 %336  ;;  %v332_v24 = vpop.permute.xlu0 %331 }
  0x90   : > { %v351_v28 = vadd.f32 %v337_v20, %v319_v16  ;;  %v352_v38 = vadd.f32 %v337_v20, %v320_v37  ;;  %v349_v39 = vadd.f32 %v332_v24, %v317_v35  ;;  %v350_v40 = vadd.f32 %v332_v24, %v318_v36 }
  0x92   : > { %359 = vst [vmem:[%s208_s11 + $0x10] sm:$0xff] %v351_v28  ;;  %360 = vst [vmem:[%s208_s11 + $0x18] sm:$0xff] %v352_v38 }
  0x93   : > { %357 = vst [vmem:[%s208_s11] sm:$0xff] %v349_v39  ;;  %358 = vst [vmem:[%s208_s11 + $0x8] sm:$0xff] %v350_v40  ;;  %v347_v45 = vpop.permute.xlu1 %346  ;;  %v342_v46 = vpop.permute.xlu0 %341 }
  0x94   : > { %v355_v47 = vadd.f32 %v347_v45, %v323_v43  ;;  %v356_v48 = vadd.f32 %v347_v45, %v324_v44  ;;  %v353_v49 = vadd.f32 %v342_v46, %v321_v41  ;;  %v354_v50 = vadd.f32 %v342_v46, %v322_v42 }
  0x96   : > { %363 = vst [vmem:[%s208_s11 + $0x30] sm:$0xff] %v355_v47  ;;  %364 = vst [vmem:[%s208_s11 + $0x38] sm:$0xff] %v356_v48 }
  0x97   : > { %361 = vst [vmem:[%s208_s11 + $0x20] sm:$0xff] %v353_v49  ;;  %362 = vst [vmem:[%s208_s11 + $0x28] sm:$0xff] %v354_v50 }
  0x98 PF: > { %s13_s14 = sadd.s32 1, %s518_s14   ;;  %s661_s12 = smov %s514_s13 }
  0x99   : > { %p10_p5 = scmp.ge.s32.totalorder %s13_s14, 4   ;;  %s662_s13 = smov %s664_s15 }
  0x9b   :  { %12 = sbr.rel (!%p10_p5) target bundleno = 2 (0x2), region = 62 }

</bundles_post_ra>
